<compile_context>
chip_gen: v6e
topology: v6e:2x2x1
jax: 0.10.0
libtpu: 0.0.40
codegen_flags: <defaults>
</compile_context>

<pallas_src>
import functools
import math

import jax
import jax.numpy as jnp
from jax.experimental import pallas as pl
from jax.experimental.pallas import tpu as pltpu


# Max tile sizes — large enough to amortize per-step overhead, small enough
# for v7x's 64 MiB VMEM. Per review: do NOT grow these.
_TN_MAX = 512    # sublane tile (multiple of 8)
_TM_MAX = 1024   # lane tile (multiple of 128)


def _rbf_kernel_body(x_ref, y_ref, o_ref, *, n_features, log_sigma, sigma_var):
    # x_ref: (1, TN, D)  — rows of pre-scaled X
    # y_ref: (1, D, TM)  — pre-scaled Y^T, feature rows lane-dense
    # o_ref: (1, TN, TM) — lane-dense output tile
    x = x_ref[0]          # (TN, D)
    yt = y_ref[0]         # (D, TM)

    # Per-feature accumulation: everything stays (TN, TM), pure VPU work.
    # Inputs already carry sqrt(0.5/length_scale), so acc == 0.5*dists/ls.
    acc = None
    for d in range(n_features):
        diff = x[:, d:d + 1] - yt[d:d + 1, :]     # (TN,1)-(1,TM) VPU broadcast
        sq = (diff * diff).astype(jnp.float32)    # accumulate in f32
        acc = sq if acc is None else acc + sq

    if log_sigma is not None:
        out = jnp.exp(log_sigma - acc)            # sigma folded into exponent
    else:
        out = sigma_var * jnp.exp(-acc)           # fallback (sigma_var <= 0)
    o_ref[0] = out.astype(o_ref.dtype)


def _round_up(x, m):
    return ((x + m - 1) // m) * m


def rbf_gram(X, Y=None, *, length_scale, sigma_var=1.0, out_dtype=None,
             tn_max=_TN_MAX, tm_max=_TM_MAX):
    """Pallas equivalent of RBFKernel(input_dim, length_scale, sigma_var).forward."""
    upranked = False
    if Y is None:
        Y = X
    if X.ndim == 2:
        X = X[None]
        upranked = True
    if Y.ndim == 2:
        Y = Y[None]
        upranked = True
    # Mixed-rank inputs: broadcast the batch dim (mirrors torch broadcasting).
    if X.shape[0] != Y.shape[0]:
        bb = max(X.shape[0], Y.shape[0])
        X = jnp.broadcast_to(X, (bb,) + X.shape[1:])
        Y = jnp.broadcast_to(Y, (bb,) + Y.shape[1:])

    B, N, D = X.shape
    _, M, DY = Y.shape
    assert D == DY

    if out_dtype is None:
        out_dtype = X.dtype

    # Hyperparameters folded at trace time (they are __init__ constants in the
    # torch module).
    # TODO(synk): if length_scale / sigma_var ever need to be traced (learnable)
    # values, pass them as SMEM scalar inputs instead of baking them here.
    ls = float(length_scale)
    sv = float(sigma_var)
    scale = (0.5 / ls) ** 0.5
    log_sigma = math.log(sv) if sv > 0.0 else None

    # Pre-scale inputs (keeps input dtype via weak-typed scalar) and transpose
    # Y to (B, D, M) so feature rows are lane-dense. Plain XLA ops, O((N+M)*D).
    Xs = X * scale
    Yt = jnp.swapaxes(Y * scale, -1, -2)

    # Pad to sublane/lane-dense shapes so every output store is unmasked;
    # the padded rows/cols are sliced off at the end.
    N_pad = _round_up(N, 8)
    M_pad = _round_up(M, 128)
    if N_pad != N:
        Xs = jnp.pad(Xs, ((0, 0), (0, N_pad - N), (0, 0)))
    if M_pad != M:
        Yt = jnp.pad(Yt, ((0, 0), (0, 0), (0, M_pad - M)))

    TN = min(N_pad, tn_max)
    TM = min(M_pad, tm_max)
    # Guarantee >= 2 grid steps on parallel axes so both TensorCores (v7x
    # megacore) get work even for B == 1 single-tile problems.
    if B * pl.cdiv(N_pad, TN) * pl.cdiv(M_pad, TM) < 2:
        if N_pad >= 16:
            TN = _round_up(N_pad // 2, 8)
        elif M_pad >= 256:
            TM = _round_up(M_pad // 2, 128)

    grid = (B, pl.cdiv(N_pad, TN), pl.cdiv(M_pad, TM))

    kernel = functools.partial(
        _rbf_kernel_body,
        n_features=D,
        log_sigma=log_sigma,
        sigma_var=sv,
    )

    in_bytes = Xs.dtype.itemsize
    out_bytes = jnp.dtype(out_dtype).itemsize
    cost = pl.CostEstimate(
        flops=B * N_pad * M_pad * (3 * D + 1),
        transcendentals=B * N_pad * M_pad,
        bytes_accessed=in_bytes * (B * N_pad * D + B * M_pad * D)
        + out_bytes * B * N_pad * M_pad,
    )

    out = pl.pallas_call(
        kernel,
        out_shape=jax.ShapeDtypeStruct((B, N_pad, M_pad), out_dtype),
        grid_spec=pltpu.PrefetchScalarGridSpec(
            num_scalar_prefetch=0,
            grid=grid,
            in_specs=[
                # X tile: invariant in the M-tile axis.
                pl.BlockSpec((1, TN, D), lambda b, i, j: (b, i, 0)),
                # Y^T tile: invariant in the N-tile axis.
                pl.BlockSpec((1, D, TM), lambda b, i, j: (b, 0, j)),
            ],
            out_specs=pl.BlockSpec((1, TN, TM), lambda b, i, j: (b, i, j)),
        ),
        compiler_params=pltpu.CompilerParams(
            dimension_semantics=("parallel", "parallel", "parallel"),
            vmem_limit_bytes=32 * 1024 * 1024,
        ),
        cost_estimate=cost,
    )(Xs, Yt)

    if N_pad != N or M_pad != M:
        out = out[:, :N, :M]
    if upranked and out.shape[0] == 1:
        out = out[0]
    return out
    # TODO(synk): for large feature dims (D >= ~16 on v6e/v7x) switch to the
    # MXU form x2 + y2 - 2*X@Y^T with jnp.maximum(dists, 0) clamping.
    # TODO(synk): for tiny problems (N*M per batch << 1e5) a fused XLA path
    # beats the per-call / per-grid-step overhead of Pallas.


def _rbf_reference(X, Y, length_scale, sigma_var):
    # Pure-JAX reference mirroring the PyTorch forward.
    d = X[..., :, None, :] - Y[..., None, :, :]
    dists = jnp.sum(d * d, axis=-1)
    return sigma_var * jnp.exp(-0.5 * dists / length_scale)


if __name__ == "__main__":
    key = jax.random.PRNGKey(0)
    kx, ky = jax.random.split(key)

    # Deterministic "module params" (from __init__): input_dim, length_scale, sigma_var.
    input_dim = 2
    length_scale = 0.5
    sigma_var = 1.5

    batch, n, m = 2, 16, 16
    X = jax.random.normal(kx, (batch, n, input_dim), dtype=jnp.float32)
    Y = jax.random.normal(ky, (batch, m, input_dim), dtype=jnp.float32)

    # Batched call with explicit Y (exercises lane padding M=16 -> 128).
    K = rbf_gram(X, Y, length_scale=length_scale, sigma_var=sigma_var)
    K = jax.block_until_ready(K)
    K_ref = _rbf_reference(X, Y, length_scale, sigma_var)
    assert K.shape == (batch, n, m)
    assert jnp.allclose(K, K_ref, atol=1e-5, rtol=1e-5)

    # Unbatched call with Y=None (uprank + squeeze path; exercises the
    # degenerate-grid split so both TCs get work).
    K2 = rbf_gram(X[0], None, length_scale=length_scale, sigma_var=sigma_var)
    K2 = jax.block_until_ready(K2)
    K2_ref = _rbf_reference(X[0], X[0], length_scale, sigma_var)
    assert K2.shape == (n, n)
    assert jnp.allclose(K2, K2_ref, atol=1e-5, rtol=1e-5)

    # Rectangular case (n != m, both unaligned) to exercise X/Y index maps and
    # sublane/lane padding independently.
    n3, m3 = 24, 40
    X3 = jax.random.normal(kx, (batch, n3, input_dim), dtype=jnp.float32)
    Y3 = jax.random.normal(ky, (batch, m3, input_dim), dtype=jnp.float32)
    K3 = rbf_gram(X3, Y3, length_scale=length_scale, sigma_var=sigma_var)
    K3 = jax.block_until_ready(K3)
    K3_ref = _rbf_reference(X3, Y3, length_scale, sigma_var)
    assert K3.shape == (batch, n3, m3)
    assert jnp.allclose(K3, K3_ref, atol=1e-5, rtol=1e-5)

    print("KERNEL_OK")
</pallas_src>

<mosaic_0001>
module attributes {stable_mosaic.version = 11 : i64} {
  func.func @_rbf_kernel_body(%arg0: i32, %arg1: i32, %arg2: i32, %arg3: memref<1x16x2xf32, #tpu.memory_space<vmem>>, %arg4: memref<1x2x128xf32, #tpu.memory_space<vmem>>, %arg5: memref<1x16x128xf32, #tpu.memory_space<vmem>>) attributes {dimension_semantics = [#tpu.dimension_semantics<parallel>, #tpu.dimension_semantics<parallel>, #tpu.dimension_semantics<parallel>], iteration_bounds = array<i64: 2, 1, 1>, scalar_prefetch = 0 : i64, scratch_operands = 0 : i64, tpu.core_type = #tpu.core_type<tc>, window_params = [{transform_indices = @transform_0, window_bounds = array<i64: 1, 16, 2>}, {transform_indices = @transform_1, window_bounds = array<i64: 1, 2, 128>}, {transform_indices = @transform_2, window_bounds = array<i64: 1, 16, 128>}]} {
    %c0 = arith.constant 0 : index
    %c0_0 = arith.constant 0 : index
    %c0_1 = arith.constant 0 : index
    %0 = vector.load %arg3[%c0, %c0_0, %c0_1] : memref<1x16x2xf32, #tpu.memory_space<vmem>>, vector<1x16x2xf32>
    %1 = vector.shape_cast %0 : vector<1x16x2xf32> to vector<16x2xf32>
    %c0_2 = arith.constant 0 : index
    %c0_3 = arith.constant 0 : index
    %c0_4 = arith.constant 0 : index
    %2 = vector.load %arg4[%c0_2, %c0_3, %c0_4] : memref<1x2x128xf32, #tpu.memory_space<vmem>>, vector<1x2x128xf32>
    %3 = vector.shape_cast %2 : vector<1x2x128xf32> to vector<2x128xf32>
    %4 = vector.extract_strided_slice %1 {offsets = [0, 0], sizes = [16, 1], strides = [1, 1]} : vector<16x2xf32> to vector<16x1xf32>
    %5 = vector.extract_strided_slice %3 {offsets = [0, 0], sizes = [1, 128], strides = [1, 1]} : vector<2x128xf32> to vector<1x128xf32>
    %6 = vector.broadcast %4 : vector<16x1xf32> to vector<16x128xf32>
    %7 = vector.broadcast %5 : vector<1x128xf32> to vector<16x128xf32>
    %8 = arith.subf %6, %7 : vector<16x128xf32>
    %9 = arith.mulf %8, %8 : vector<16x128xf32>
    %10 = vector.extract_strided_slice %1 {offsets = [0, 1], sizes = [16, 1], strides = [1, 1]} : vector<16x2xf32> to vector<16x1xf32>
    %11 = vector.extract_strided_slice %3 {offsets = [1, 0], sizes = [1, 128], strides = [1, 1]} : vector<2x128xf32> to vector<1x128xf32>
    %12 = vector.broadcast %10 : vector<16x1xf32> to vector<16x128xf32>
    %13 = vector.broadcast %11 : vector<1x128xf32> to vector<16x128xf32>
    %14 = arith.subf %12, %13 : vector<16x128xf32>
    %15 = arith.mulf %14, %14 : vector<16x128xf32>
    %16 = arith.addf %9, %15 : vector<16x128xf32>
    %cst = arith.constant 0.405465096 : f32
    %17 = vector.broadcast %cst : f32 to vector<16x128xf32>
    %18 = arith.subf %17, %16 : vector<16x128xf32>
    %19 = math.exp %18 : vector<16x128xf32>
    %c0_5 = arith.constant 0 : index
    %c0_6 = arith.constant 0 : index
    %c0_7 = arith.constant 0 : index
    %20 = vector.load %arg5[%c0_5, %c0_6, %c0_7] : memref<1x16x128xf32, #tpu.memory_space<vmem>>, vector<1x16x128xf32>
    %21 = vector.shape_cast %20 : vector<1x16x128xf32> to vector<16x128xf32>
    %22 = vector.shape_cast %19 : vector<16x128xf32> to vector<1x16x128xf32>
    tpu.vector_store %arg5[%c0_5, %c0_6, %c0_7], %22 {strides = array<i32>} : memref<1x16x128xf32, #tpu.memory_space<vmem>>, vector<1x16x128xf32>,
    return
  }
  func.func @transform_0(%arg0: i32, %arg1: i32, %arg2: i32) -> (i32, i32, i32) {
    %c0_i32 = arith.constant 0 : i32
    %c0_i32_0 = arith.constant 0 : i32
    return %arg0, %arg1, %c0_i32 : i32, i32, i32
  }
  func.func @transform_1(%arg0: i32, %arg1: i32, %arg2: i32) -> (i32, i32, i32) {
    %c0_i32 = arith.constant 0 : i32
    %c0_i32_0 = arith.constant 0 : i32
    return %arg0, %c0_i32, %arg2 : i32, i32, i32
  }
  func.func @transform_2(%arg0: i32, %arg1: i32, %arg2: i32) -> (i32, i32, i32) {
    %c0_i32 = arith.constant 0 : i32
    return %arg0, %arg1, %arg2 : i32, i32, i32
  }
}

</mosaic_0001>

<bundles_post_ra>
// kernel: tpu_custom_call.1
= control target key start
LH: loop header
LB: loop body
LE: loop exit
PB: predicated region body
PF: predicated region fallthrough
CT: control target
= control target key end

     0   :  { %7 = vsyncpa [#allocation3], 0  ;;  %s669_s0 = inlined_call_operand.vmem [shape: f32[2,16,2], index: 0, kind: input, shape index: {}]   ;;  %s670_s1 = inlined_call_operand.vmem [shape: f32[2,2,128], index: 1, kind: input, shape index: {}]   ;;  %s671_s2 = inlined_call_operand.hbm [shape: f32[2,16,128], index: 2, kind: output, shape index: {}]  }
   0x1   :  { %9 = vsyncpa [#allocation3 + $0x1], 0  ;;  %s552_s9 = smov 0   ;;  %s554_s10 = smov 0  }
   0x2   :  { %s556_s11 = smov 0   ;;  %s558_s12 = smov 0  }
   0x3   :  { %s560_s13 = smov 0   ;;  %s562_s14 = smov 0  }
   0x4 LB: > { %s372_s15 = sadd.s32 4294967295, %s530_s14   ;;  %s373_s16 = sadd.s32 4294967294, %s530_s14   ;;  %s530_s14 = sphi %s562_s14, %s15_s14   ;;  %s526_s13 = sphi %s560_s13, %s678_s13   ;;  %s522_s12 = sphi %s558_s12, %s677_s12   ;;  %s518_s11 = sphi %s556_s11, %s676_s11   ;;  %s514_s10 = sphi %s554_s10, %s675_s10   ;;  %s510_s9 = sphi %s552_s9, %s674_s9  }
   0x5   : > { %s34_s17 = sadd.s32 1, %s526_s13  ;;  %s101_s18 = sadd.s32 1, %s518_s11 }
   0x6   : > { %p36_p0 = scmp.ge.s32.totalorder %s34_s17, 2  ;;  %p111_p1 = scmp.ne.s32.totalorder %s518_s11, %s514_s10 }
   0x7   : > { %p112_p2 = scmp.eq.s32.totalorder %s372_s15, 1  ;;  %p117_p3 = scmp.ne.s32.totalorder %s514_s10, %s510_s9 }
   0x8   : > { %s680_s17 = smov (%p36_p0, %s34_s17), 0  ;;  %p118_p5 = scmp.eq.s32.totalorder %s373_s16, 1 }
   0x9   : > { %p592_p4 = por %p112_p2, %p111_p1  ;;  %s94_s20 = ssub.s32 %s526_s13, %s680_s17 }
   0xa   : > { %p376_p6 = scmp.ge.s32.totalorder %s530_s14, 1  ;;  %p99_p7 = scmp.eq.s32.totalorder %s94_s20, 0 }
   0xb   : > { %p599_p8 = por %p118_p5, %p117_p3  ;;  %p159_p9 = scmp.lt.s32.totalorder %s530_s14, 3 }
   0xc   : > { %s605_s22 = scalar_select %p99_p7, %s518_s11, %s101_s18  }
   0xd   : > { %p160_p10 = pnand %p376_p6, %p159_p9 }
   0xe   : > { %p193_p11 = scmp.lt.s32.totalorder (!%p160_p10), %s522_s12, 1  ;;  %s189_s4 = sand.u32 (!%p160_p10), 1, %s514_s10  }
   0xf   : > { %163 = sbr.rel (%p160_p10) target bundleno = 191 (0xbf), region = 28  ;;  %s377_s5 = sshll.u32 (!%p160_p10), %s189_s4, 4 }
  0x10   : > { %s387_s6 = sshll.u32 (!%p160_p10), %s522_s12, 8  ;;  %s191_s7 = scalar_lea.vmem (!%p160_p10), [#allocation2], %s377_s5 }
  0x11   : > { %s274_s8 = sshll.u32 (!%p160_p10), %s191_s7, 4  ;;  %s620_s18 = scalar_lea.hbm (!%p160_p10), %s671_s2, %s387_s6  ;;  %s622_s8 = int_to_ptr.vmem [resolvable:$true] %s274_s8 }
  0x12   : > { %s624_s20 = scalar_lea.sflag (!%p160_p10), [#allocation3], %s189_s4 }
  0x14   : > { %v532_v0 = vmov 1   ;;  %v533_v1 = vmov 0   ;;  %s194_s23 = scalar_select %p193_p11, %s522_s12, 1  ;;  %v223_v4 = vlaneseq }
  0x15   : > { %448 = vset.pattern.permute.xlu1 %v532_v0  ;;  %447 = vset.pattern.permute.xlu0 %v533_v1  ;;  %s534_s12 = smov [#allocation2]  }
  0x16   : > { %s386_s24 = sshll.u32 %s194_s23, 4  ;;  %s380_s28 = sshll.u32 %s194_s23, 1  ;;  %v224_v5 = vshrl.u32 %v223_v4, 7 }
  0x17   : > { %s200_s27 = scalar_lea.vmem %s669_s0, %s386_s24  ;;  %s208_s3 = scalar_lea.vmem %s670_s1, %s380_s28 }
  0x18   : > { %v210_v2 = vld [vmem:[%s200_s27] sm:$0xff]  ;;  %v211_v3 = vld [vmem:[%s200_s27 + $0x8] sm:$0xff]  ;;  %v241_v6 = vsub.s32 1, %v224_v5  ;;  %v225_v7 = vsub.s32 0, %v224_v5  ;;  %s454_s23 = scalar_lea.vmem %s622_s8, 256  ;;  %s458_s24 = sshll.u32 %s534_s12, 4  ;;  %s459_s24 = int_to_ptr.vmem [resolvable:$false] %s458_s24 }
  0x19   : > { %232 = vperm.xlu1 %448, %v210_v2   ;;  %215 = vperm.xlu0 %447, %v210_v2   ;;  %v212_v8 = vld [vmem:[%s208_s3] sm:$0x3]  ;;  %p455_p12 = scmp.ne.s32.totalorder %s622_s8, %s454_s23  ;;  %s460_s25 = scalar_lea.vmem %s459_s24, 512 }
  0x1a   : > { %v242_v9 = vrot.slane %v212_v8, %v241_v6  ;;  %v226_v10 = vrot.slane %v212_v8, %v225_v7  ;;  %p461_p1 = scmp.lt.s32.totalorder %s622_s8, %s459_s24  ;;  %p462_p2 = scmp.lt.s32.totalorder %s460_s25, %s454_s23 }
  0x1b   : > { %p456_p13 = pnand %p455_p12, %p592_p4 }
  0x1c   : > { %p463_p3 = por %p462_p2, %p461_p1 }
  0x1d   : > { %236 = vperm.xlu1 %448, %v211_v3   ;;  %220 = vperm.xlu0 %447, %v211_v3   ;;  %p457_p0 = pneg %p456_p13 }
  0x1f   : > { %p464_p5 = pnand %p463_p3, %p457_p0 }
  0x21   : > { %449 = vset.pattern.permute.xlu0 %v532_v0 }
  0x94   : > { %v233_v11 = vpop.permute.xlu1 %232  ;;  %v216_v12 = vpop.permute.xlu0 %215 }
  0x95   : > { %v243_v13 = vsub.f32 %v233_v11, %v242_v9  ;;  %v227_v14 = vsub.f32 %v216_v12, %v226_v10 }
  0x97   : > { %v245_v15 = vmul.f32 %v243_v13, %v243_v13  ;;  %v229_v16 = vmul.f32 %v227_v14, %v227_v14 }
  0x98   : > { %v237_v17 = vpop.permute.xlu1 %236  ;;  %v221_v18 = vpop.permute.xlu0 %220 }
  0x99   : > { %v247_v19 = vadd.f32 %v245_v15, %v229_v16  ;;  %v244_v20 = vsub.f32 %v237_v17, %v242_v9  ;;  %v228_v21 = vsub.f32 %v221_v18, %v226_v10 }
  0x9b   : > { %v249_v22 = vsub.f32 0.4054651, %v247_v19  ;;  %v246_v23 = vmul.f32 %v244_v20, %v244_v20  ;;  %v230_v24 = vmul.f32 %v228_v21, %v228_v21 }
  0x9d   : > { %v251_v25 = vmul.f32 1.442695, %v249_v22  ;;  %v248_v26 = vadd.f32 %v246_v23, %v230_v24 }
  0x9f   : > { %450 = vpow2.f32 %v251_v25  ;;  %v250_v27 = vsub.f32 0.4054651, %v248_v26 }
  0xa1   : > { %v253_v28 = vmul.f32 1.442695, %v250_v27 }
  0xa3   : > { %452 = vpow2.f32 %v253_v28 }
  0xac   : > { %v451_v29 = vpop.eup %450 }
  0xad   : > { %255 = vst [vmem:[%s191_s7] sm:$0xff] %v451_v29 }
  0xb0   : > { %v453_v30 = vpop.eup %452 }
  0xb1   : > { %256 = vst [vmem:[%s191_s7 + $0x8] sm:$0xff] %v453_v30 }
  0xb2   : > { %467 = shalt.err (!%p464_p5)
}
  0xb3   : > { %s468_s26 = scalar_lea.hbm %s620_s18, 256  ;;  %s472_s29 = scalar_lea.hbm %s671_s2, 512 }
  0xb4   : > { %p469_p6 = scmp.ne.s32.totalorder %s620_s18, %s468_s26  ;;  %p473_p10 = scmp.lt.s32.totalorder %s620_s18, %s671_s2 }
  0xb5   : > { %p474_p11 = scmp.lt.s32.totalorder %s472_s29, %s468_s26 }
  0xb6   : > { %p470_p7 = pnand %p469_p6, %p592_p4 }
  0xb7   : > { %p475_p12 = por %p474_p11, %p473_p10 }
  0xb8   : > { %p471_p9 = pneg %p470_p7 }
  0xba   : > { %p476_p13 = pnand %p475_p12, %p471_p9 }
  0xbc   : > { %479 = shalt.err (!%p476_p13)
}
  0xbd   : > { %s535_s4 = smov 128   ;;  %s536_s5 = smov 8  }
  0xbe   : > { %388 = dma.vmem_to_hbm [thread:$0]  (%p592_p4), %s622_s8, 256, %s620_s18, %s624_s20, %s535_s4, %s535_s4, %s536_s5  }
  0xbf PF: > { %p394_p0 = scmp.ge.s32.totalorder %s530_s14, 2  ;;  %s289_s6 = sand.u32 1, %s510_s9  }
  0xc0   : > { %s290_s7 = scalar_lea.sflag [#allocation3], %s289_s6 }
  0xc1   : > { %p391_p1 = pnand %p394_p0, %p599_p8 }
  0xc3   : > { %p392_p2 = pneg %p391_p1 }
  0xc5   : > { %505 = dma.done.wait (%p392_p2), %s290_s7, 256  }
  0xc6   : > { %507 = vsyncadd (%p392_p2), %s290_s7, 4294967040  ;;  %s15_s14 = sadd.s32 1, %s530_s14   ;;  %s674_s9 = smov %s514_s10 }
  0xc7   : > { %p12_p3 = scmp.ge.s32.totalorder %s15_s14, 4   ;;  %s675_s10 = smov %s518_s11 }
  0xc8   : > { %s676_s11 = smov %s605_s22  ;;  %s677_s12 = smov %s526_s13 }
  0xc9   : > { %s678_s13 = smov %s680_s17  ;;  %14 = sbr.rel (!%p12_p3) target bundleno = 4 (0x4), region = 66 }
  0xce   :  { %295 = vsyncpa [#allocation3], 1 }
  0xcf   :  { %297 = vsyncpa [#allocation3 + $0x1], 1 }

</bundles_post_ra>
